<compile_context>
chip_gen: v7x
topology: tpu7x:2x2x1
jax: 0.10.0
libtpu: 0.0.40
codegen_flags: <defaults>
</compile_context>

<pallas_src>
import functools
import math
import numpy as np
import jax
import jax.numpy as jnp
from jax.experimental import pallas as pl
from jax.experimental.pallas import tpu as pltpu


def lstm_seq_kernel(x_ref, h0_ref, c0_ref, wx_ref, whc_ref, wco_ref, b_ref,
                    hseq_ref, cfin_ref, h_scr, c_scr):
    CHUNK, B, H = x_ref.shape
    w_dtype = wx_ref.dtype

    # Initialize the on-chip h/c carry on the first grid step only.
    @pl.when(pl.program_id(0) == 0)
    def _():
        h_scr[...] = h0_ref[...].astype(jnp.float32)
        c_scr[...] = c0_ref[...].astype(jnp.float32)

    # x-path contribution for the whole chunk in one wide MXU dot (off the
    # serial recurrence): [CHUNK*B, H] @ [H, 4H], plus the pre-summed biases.
    xg = jnp.dot(x_ref[...].reshape(CHUNK * B, H).astype(w_dtype),
                 wx_ref[...], preferred_element_type=jnp.float32)
    xg = (xg + b_ref[...]).reshape(CHUNK, B, 4 * H)

    whc = whc_ref[...]          # [2H, 4H] : rows = [h-weights ; (wci|wcf|0|0)]
    wco = wco_ref[...]          # [H, H]

    h = h_scr[...]              # f32 carry
    c = c_scr[...]              # f32 carry

    for s in range(CHUNK):      # small static chunk: fully unrolled
        hc = jnp.concatenate([h.astype(w_dtype), c.astype(w_dtype)], axis=-1)
        gates = xg[s] + jnp.dot(hc, whc, preferred_element_type=jnp.float32)

        i = jax.nn.sigmoid(gates[:, 0 * H:1 * H])
        f = jax.nn.sigmoid(gates[:, 1 * H:2 * H])
        g = jnp.tanh(gates[:, 2 * H:3 * H])
        c = f * c + i * g
        # NOTE: wco is applied to the *new* cell state, as in the module.
        o = jax.nn.sigmoid(gates[:, 3 * H:4 * H]
                           + jnp.dot(c.astype(w_dtype), wco,
                                     preferred_element_type=jnp.float32))
        h = o * jnp.tanh(c)
        hseq_ref[s] = h.astype(hseq_ref.dtype)

    h_scr[...] = h
    c_scr[...] = c
    cfin_ref[...] = c           # constant block index: last write survives


def pack_lstm_params(W, b, param_dtype=jnp.bfloat16):
    """Repack the 11 stacked Linear layers into 3 fused operands + 1 bias.

    Returns (Wx [H,4H], Whc [2H,4H], Wco [H,H], bias [1,4H]); gate column
    order is [i | f | g | o].  Call once (outside any scan body).
    """
    H = W.shape[-1]
    Wx = jnp.concatenate([W[0], W[3], W[6], W[8]], axis=1)            # [H, 4H]
    Wh = jnp.concatenate([W[1], W[4], W[7], W[9]], axis=1)            # [H, 4H]
    zeros = jnp.zeros((H, H), W.dtype)
    Wc = jnp.concatenate([W[2], W[5], zeros, zeros], axis=1)          # [H, 4H]
    Whc = jnp.concatenate([Wh, Wc], axis=0)                           # [2H, 4H]
    Wco = W[10]                                                       # [H, H]

    bf = b.reshape(11, -1).astype(jnp.float32)
    bias = jnp.concatenate([
        bf[0] + bf[1] + bf[2],        # b_i  (Wxi + Whi + wci)
        bf[3] + bf[4] + bf[5],        # b_f  (Wxf + Whf + wcf)
        bf[6] + bf[7],                # b_g  (Wxc + Whc)
        bf[8] + bf[9] + bf[10],       # b_o  (Wxo + Who + wco)
    ], axis=0).reshape(1, -1)                                         # [1, 4H]

    return (Wx.astype(param_dtype), Whc.astype(param_dtype),
            Wco.astype(param_dtype), bias)


@functools.partial(jax.jit, static_argnames=("chunk", "param_dtype"))
def lstm_sequence(x_seq, h0, c0, W, b, *, chunk=8, param_dtype=jnp.bfloat16):
    """Run the cell over a [T, B, H] sequence in ONE kernel launch.

    Returns (h_seq [T,B,H] in x.dtype, c_final [B,H] f32).
    """
    T, B, H = x_seq.shape
    chunk = min(chunk, T)
    assert T % chunk == 0, "T must be a multiple of chunk"
    Wx, Whc, Wco, bias = pack_lstm_params(W, b, param_dtype)

    grid = (T // chunk,)
    const2 = lambda t: (0, 0)
    h_seq, c_fin = pl.pallas_call(
        lstm_seq_kernel,
        grid=grid,
        in_specs=[
            pl.BlockSpec((chunk, B, H), lambda t: (t, 0, 0)),   # x (time-blocked)
            pl.BlockSpec((B, H), const2),                       # h0
            pl.BlockSpec((B, H), const2),                       # c0
            pl.BlockSpec((H, 4 * H), const2),                   # Wx (resident)
            pl.BlockSpec((2 * H, 4 * H), const2),               # Whc (resident)
            pl.BlockSpec((H, H), const2),                       # Wco (resident)
            pl.BlockSpec((1, 4 * H), const2),                   # fused bias
        ],
        out_specs=(
            pl.BlockSpec((chunk, B, H), lambda t: (t, 0, 0)),   # h over time
            pl.BlockSpec((B, H), const2),                       # final c (f32)
        ),
        out_shape=(jax.ShapeDtypeStruct((T, B, H), x_seq.dtype),
                   jax.ShapeDtypeStruct((B, H), jnp.float32)),
        scratch_shapes=[pltpu.VMEM((B, H), jnp.float32),        # h carry
                        pltpu.VMEM((B, H), jnp.float32)],       # c carry
        compiler_params=pltpu.CompilerParams(
            dimension_semantics=("arbitrary",)),                # recurrence
    )(x_seq, h0, c0, Wx, Whc, Wco, bias)
    return h_seq, c_fin


def lstm_forward(x, h, c, W, b, *, param_dtype=jnp.bfloat16):
    """One LSTM-cell step (the module's exact forward): x, h, c are [B, H]."""
    h_seq, c_new = lstm_sequence(x[None], h, c, W, b, chunk=1,
                                 param_dtype=param_dtype)
    return h_seq[0], c_new


def lstm_reference_step(x, h, c, W, b, param_dtype=jnp.bfloat16):
    """Pure-JAX reference mirroring the PyTorch forward, with the same bf16
    rounding of weights / matmul inputs as the kernel path (f32 carry)."""
    f32 = jnp.float32
    Wq = W.astype(param_dtype)
    bq = b.reshape(11, 1, -1).astype(f32)
    dot = lambda a, w: jnp.dot(a.astype(param_dtype), w,
                               preferred_element_type=f32)
    c = c.astype(f32)
    i = jax.nn.sigmoid(dot(x, Wq[0]) + dot(h, Wq[1]) + dot(c, Wq[2])
                       + bq[0] + bq[1] + bq[2])
    f = jax.nn.sigmoid(dot(x, Wq[3]) + dot(h, Wq[4]) + dot(c, Wq[5])
                       + bq[3] + bq[4] + bq[5])
    c_new = f * c + i * jnp.tanh(dot(x, Wq[6]) + dot(h, Wq[7]) + bq[6] + bq[7])
    o = jax.nn.sigmoid(dot(x, Wq[8]) + dot(h, Wq[9]) + dot(c_new, Wq[10])
                       + bq[8] + bq[9] + bq[10])
    h_new = o * jnp.tanh(c_new)
    return h_new, c_new


if __name__ == "__main__":
    B, H, T = 8, 128, 16   # batch, n_hidden (lane-friendly), sequence length

    key = jax.random.PRNGKey(0)
    kx, kh, kc, kw, kb = jax.random.split(key, 5)

    x_seq = jax.random.normal(kx, (T, B, H), dtype=jnp.float32)
    h0 = jax.random.normal(kh, (B, H), dtype=jnp.float32)
    c0 = jax.random.normal(kc, (B, H), dtype=jnp.float32)

    # Deterministic init matching nn.Linear's U(-1/sqrt(H), 1/sqrt(H)).
    bound = 1.0 / math.sqrt(H)
    W = jax.random.uniform(kw, (11, H, H), dtype=jnp.float32,
                           minval=-bound, maxval=bound)
    b = jax.random.uniform(kb, (11, 1, H), dtype=jnp.float32,
                           minval=-bound, maxval=bound)

    # --- Single step: the module's exact forward semantics. ---
    h1, c1 = jax.block_until_ready(lstm_forward(x_seq[0], h0, c0, W, b))
    h1_ref, c1_ref = lstm_reference_step(x_seq[0], h0, c0, W, b)
    assert np.allclose(np.asarray(h1), np.asarray(h1_ref), atol=2e-3, rtol=2e-3)
    assert np.allclose(np.asarray(c1), np.asarray(c1_ref), atol=2e-3, rtol=2e-3)

    # --- Full sequence: T steps in one kernel launch, weights resident. ---
    h_seq, c_fin = jax.block_until_ready(
        lstm_sequence(x_seq, h0, c0, W, b, chunk=8))

    h_r, c_r = h0, c0
    hs = []
    for t in range(T):
        h_r, c_r = lstm_reference_step(x_seq[t], h_r, c_r, W, b)
        hs.append(h_r)
    h_seq_ref = jnp.stack(hs)

    assert np.allclose(np.asarray(h_seq), np.asarray(h_seq_ref),
                       atol=2e-3, rtol=2e-3)
    assert np.allclose(np.asarray(c_fin), np.asarray(c_r),
                       atol=2e-3, rtol=2e-3)
    print("KERNEL_OK")
</pallas_src>

<mosaic_0001>
module attributes {stable_mosaic.version = 11 : i64} {
  func.func @lstm_seq_kernel(%arg0: i32, %arg1: memref<1x8x128xf32, #tpu.memory_space<vmem>>, %arg2: memref<8x128xf32, #tpu.memory_space<vmem>>, %arg3: memref<8x128xf32, #tpu.memory_space<vmem>>, %arg4: memref<128x512xbf16, #tpu.memory_space<vmem>>, %arg5: memref<256x512xbf16, #tpu.memory_space<vmem>>, %arg6: memref<128x128xbf16, #tpu.memory_space<vmem>>, %arg7: memref<1x512xf32, #tpu.memory_space<vmem>>, %arg8: memref<1x8x128xf32, #tpu.memory_space<vmem>>, %arg9: memref<8x128xf32, #tpu.memory_space<vmem>>, %arg10: memref<8x128xf32, #tpu.memory_space<vmem>>, %arg11: memref<8x128xf32, #tpu.memory_space<vmem>>) attributes {dimension_semantics = [#tpu.dimension_semantics<arbitrary>], iteration_bounds = array<i64: 1>, scalar_prefetch = 0 : i64, scratch_operands = 2 : i64, tpu.core_type = #tpu.core_type<tc>, window_params = [{transform_indices = @transform_0, window_bounds = array<i64: 1, 8, 128>}, {pipeline_mode = #tpu.pipeline_mode<synchronous>, transform_indices = @transform_1, window_bounds = array<i64: 8, 128>}, {pipeline_mode = #tpu.pipeline_mode<synchronous>, transform_indices = @transform_2, window_bounds = array<i64: 8, 128>}, {pipeline_mode = #tpu.pipeline_mode<synchronous>, transform_indices = @transform_3, window_bounds = array<i64: 128, 512>}, {pipeline_mode = #tpu.pipeline_mode<synchronous>, transform_indices = @transform_4, window_bounds = array<i64: 256, 512>}, {pipeline_mode = #tpu.pipeline_mode<synchronous>, transform_indices = @transform_5, window_bounds = array<i64: 128, 128>}, {pipeline_mode = #tpu.pipeline_mode<synchronous>, transform_indices = @transform_6, window_bounds = array<i64: 1, 512>}, {transform_indices = @transform_7, window_bounds = array<i64: 1, 8, 128>}, {pipeline_mode = #tpu.pipeline_mode<synchronous>, transform_indices = @transform_8, window_bounds = array<i64: 8, 128>}]} {
    %c0_i32 = arith.constant 0 : i32
    %0 = arith.cmpi eq, %arg0, %c0_i32 : i32
    %1 = arith.extui %0 : i1 to i32
    %c0_i32_0 = arith.constant 0 : i32
    %2 = arith.cmpi ne, %1, %c0_i32_0 : i32
    scf.if %2 {
      %c0_29 = arith.constant 0 : index
      %c0_30 = arith.constant 0 : index
      %56 = vector.load %arg2[%c0_29, %c0_30] : memref<8x128xf32, #tpu.memory_space<vmem>>, vector<8x128xf32>
      %c0_31 = arith.constant 0 : index
      %c0_32 = arith.constant 0 : index
      %57 = vector.load %arg10[%c0_31, %c0_32] : memref<8x128xf32, #tpu.memory_space<vmem>>, vector<8x128xf32>
      tpu.vector_store %arg10[%c0_31, %c0_32], %56 {strides = array<i32>} : memref<8x128xf32, #tpu.memory_space<vmem>>, vector<8x128xf32>,
      %c0_33 = arith.constant 0 : index
      %c0_34 = arith.constant 0 : index
      %58 = vector.load %arg3[%c0_33, %c0_34] : memref<8x128xf32, #tpu.memory_space<vmem>>, vector<8x128xf32>
      %c0_35 = arith.constant 0 : index
      %c0_36 = arith.constant 0 : index
      %59 = vector.load %arg11[%c0_35, %c0_36] : memref<8x128xf32, #tpu.memory_space<vmem>>, vector<8x128xf32>
      tpu.vector_store %arg11[%c0_35, %c0_36], %58 {strides = array<i32>} : memref<8x128xf32, #tpu.memory_space<vmem>>, vector<8x128xf32>,
    } else {
    }
    %c0 = arith.constant 0 : index
    %c0_1 = arith.constant 0 : index
    %c0_2 = arith.constant 0 : index
    %3 = vector.load %arg1[%c0, %c0_1, %c0_2] : memref<1x8x128xf32, #tpu.memory_space<vmem>>, vector<1x8x128xf32>
    %4 = vector.shape_cast %3 : vector<1x8x128xf32> to vector<8x128xf32>
    %5 = arith.truncf %4 : vector<8x128xf32> to vector<8x128xbf16>
    %c0_3 = arith.constant 0 : index
    %c0_4 = arith.constant 0 : index
    %6 = vector.load %arg4[%c0_3, %c0_4] : memref<128x512xbf16, #tpu.memory_space<vmem>>, vector<128x512xbf16>
    %cst = arith.constant dense<0.000000e+00> : vector<8x512xf32>
    %7 = tpu.matmul %5, %6, %cst {dimension_numbers = #tpu.dot_dimension_numbers<[1], [0], [0], [1], [0, 0, 1, 1], [], []>} : vector<8x128xbf16>, vector<128x512xbf16>, vector<8x512xf32> -> vector<8x512xf32>
    %c0_5 = arith.constant 0 : index
    %c0_6 = arith.constant 0 : index
    %8 = vector.load %arg7[%c0_5, %c0_6] : memref<1x512xf32, #tpu.memory_space<vmem>>, vector<1x512xf32>
    %9 = vector.broadcast %8 : vector<1x512xf32> to vector<8x512xf32>
    %10 = arith.addf %7, %9 : vector<8x512xf32>
    %11 = vector.shape_cast %10 : vector<8x512xf32> to vector<1x8x512xf32>
    %c0_7 = arith.constant 0 : index
    %c0_8 = arith.constant 0 : index
    %12 = vector.load %arg5[%c0_7, %c0_8] : memref<256x512xbf16, #tpu.memory_space<vmem>>, vector<256x512xbf16>
    %c0_9 = arith.constant 0 : index
    %c0_10 = arith.constant 0 : index
    %13 = vector.load %arg6[%c0_9, %c0_10] : memref<128x128xbf16, #tpu.memory_space<vmem>>, vector<128x128xbf16>
    %c0_11 = arith.constant 0 : index
    %c0_12 = arith.constant 0 : index
    %14 = vector.load %arg10[%c0_11, %c0_12] : memref<8x128xf32, #tpu.memory_space<vmem>>, vector<8x128xf32>
    %c0_13 = arith.constant 0 : index
    %c0_14 = arith.constant 0 : index
    %15 = vector.load %arg11[%c0_13, %c0_14] : memref<8x128xf32, #tpu.memory_space<vmem>>, vector<8x128xf32>
    %16 = arith.truncf %14 : vector<8x128xf32> to vector<8x128xbf16>
    %17 = arith.truncf %15 : vector<8x128xf32> to vector<8x128xbf16>
    %18 = tpu.concatenate %16, %17 in 1 : vector<8x128xbf16>, vector<8x128xbf16> -> vector<8x256xbf16>
    %19 = vector.shape_cast %11 : vector<1x8x512xf32> to vector<8x512xf32>
    %cst_15 = arith.constant dense<0.000000e+00> : vector<8x512xf32>
    %20 = tpu.matmul %18, %12, %cst_15 {dimension_numbers = #tpu.dot_dimension_numbers<[1], [0], [0], [1], [0, 0, 1, 1], [], []>} : vector<8x256xbf16>, vector<256x512xbf16>, vector<8x512xf32> -> vector<8x512xf32>
    %21 = arith.addf %19, %20 : vector<8x512xf32>
    %22 = vector.extract_strided_slice %21 {offsets = [0, 0], sizes = [8, 128], strides = [1, 1]} : vector<8x512xf32> to vector<8x128xf32>
    %23 = arith.negf %22 : vector<8x128xf32>
    %24 = math.exp %23 : vector<8x128xf32>
    %cst_16 = arith.constant 1.000000e+00 : f32
    %25 = vector.broadcast %cst_16 : f32 to vector<8x128xf32>
    %26 = arith.addf %25, %24 : vector<8x128xf32>
    %27 = arith.divf %25, %26 : vector<8x128xf32>
    %28 = vector.extract_strided_slice %21 {offsets = [0, 128], sizes = [8, 128], strides = [1, 1]} : vector<8x512xf32> to vector<8x128xf32>
    %29 = arith.negf %28 : vector<8x128xf32>
    %30 = math.exp %29 : vector<8x128xf32>
    %cst_17 = arith.constant 1.000000e+00 : f32
    %31 = vector.broadcast %cst_17 : f32 to vector<8x128xf32>
    %32 = arith.addf %31, %30 : vector<8x128xf32>
    %33 = arith.divf %31, %32 : vector<8x128xf32>
    %34 = vector.extract_strided_slice %21 {offsets = [0, 256], sizes = [8, 128], strides = [1, 1]} : vector<8x512xf32> to vector<8x128xf32>
    %35 = math.tanh %34 : vector<8x128xf32>
    %36 = arith.mulf %33, %15 : vector<8x128xf32>
    %37 = arith.mulf %27, %35 : vector<8x128xf32>
    %38 = arith.addf %36, %37 : vector<8x128xf32>
    %39 = vector.extract_strided_slice %21 {offsets = [0, 384], sizes = [8, 128], strides = [1, 1]} : vector<8x512xf32> to vector<8x128xf32>
    %40 = arith.truncf %38 : vector<8x128xf32> to vector<8x128xbf16>
    %cst_18 = arith.constant dense<0.000000e+00> : vector<8x128xf32>
    %41 = tpu.matmul %40, %13, %cst_18 {dimension_numbers = #tpu.dot_dimension_numbers<[1], [0], [0], [1], [0, 0, 1, 1], [], []>} : vector<8x128xbf16>, vector<128x128xbf16>, vector<8x128xf32> -> vector<8x128xf32>
    %42 = arith.addf %39, %41 : vector<8x128xf32>
    %43 = arith.negf %42 : vector<8x128xf32>
    %44 = math.exp %43 : vector<8x128xf32>
    %cst_19 = arith.constant 1.000000e+00 : f32
    %45 = vector.broadcast %cst_19 : f32 to vector<8x128xf32>
    %46 = arith.addf %45, %44 : vector<8x128xf32>
    %47 = arith.divf %45, %46 : vector<8x128xf32>
    %48 = math.tanh %38 : vector<8x128xf32>
    %49 = arith.mulf %47, %48 : vector<8x128xf32>
    %c0_20 = arith.constant 0 : index
    %c0_21 = arith.constant 0 : index
    %c0_22 = arith.constant 0 : index
    %50 = vector.load %arg8[%c0_20, %c0_21, %c0_22] : memref<1x8x128xf32, #tpu.memory_space<vmem>>, vector<1x8x128xf32>
    %51 = vector.shape_cast %50 : vector<1x8x128xf32> to vector<8x128xf32>
    %52 = vector.shape_cast %49 : vector<8x128xf32> to vector<1x8x128xf32>
    tpu.vector_store %arg8[%c0_20, %c0_21, %c0_22], %52 {strides = array<i32>} : memref<1x8x128xf32, #tpu.memory_space<vmem>>, vector<1x8x128xf32>,
    %c0_23 = arith.constant 0 : index
    %c0_24 = arith.constant 0 : index
    %53 = vector.load %arg10[%c0_23, %c0_24] : memref<8x128xf32, #tpu.memory_space<vmem>>, vector<8x128xf32>
    tpu.vector_store %arg10[%c0_23, %c0_24], %49 {strides = array<i32>} : memref<8x128xf32, #tpu.memory_space<vmem>>, vector<8x128xf32>,
    %c0_25 = arith.constant 0 : index
    %c0_26 = arith.constant 0 : index
    %54 = vector.load %arg11[%c0_25, %c0_26] : memref<8x128xf32, #tpu.memory_space<vmem>>, vector<8x128xf32>
    tpu.vector_store %arg11[%c0_25, %c0_26], %38 {strides = array<i32>} : memref<8x128xf32, #tpu.memory_space<vmem>>, vector<8x128xf32>,
    %c0_27 = arith.constant 0 : index
    %c0_28 = arith.constant 0 : index
    %55 = vector.load %arg9[%c0_27, %c0_28] : memref<8x128xf32, #tpu.memory_space<vmem>>, vector<8x128xf32>
    tpu.vector_store %arg9[%c0_27, %c0_28], %38 {strides = array<i32>} : memref<8x128xf32, #tpu.memory_space<vmem>>, vector<8x128xf32>,
    return
  }
  func.func @transform_0(%arg0: i32) -> (i32, i32, i32) {
    %c0_i32 = arith.constant 0 : i32
    %c0_i32_0 = arith.constant 0 : i32
    %c0_i32_1 = arith.constant 0 : i32
    return %arg0, %c0_i32, %c0_i32_0 : i32, i32, i32
  }
  func.func @transform_1(%arg0: i32) -> (i32, i32) {
    %c0_i32 = arith.constant 0 : i32
    %c0_i32_0 = arith.constant 0 : i32
    %c0_i32_1 = arith.constant 0 : i32
    return %c0_i32, %c0_i32_0 : i32, i32
  }
  func.func @transform_2(%arg0: i32) -> (i32, i32) {
    %c0_i32 = arith.constant 0 : i32
    %c0_i32_0 = arith.constant 0 : i32
    %c0_i32_1 = arith.constant 0 : i32
    return %c0_i32, %c0_i32_0 : i32, i32
  }
  func.func @transform_3(%arg0: i32) -> (i32, i32) {
    %c0_i32 = arith.constant 0 : i32
    %c0_i32_0 = arith.constant 0 : i32
    %c0_i32_1 = arith.constant 0 : i32
    return %c0_i32, %c0_i32_0 : i32, i32
  }
  func.func @transform_4(%arg0: i32) -> (i32, i32) {
    %c0_i32 = arith.constant 0 : i32
    %c0_i32_0 = arith.constant 0 : i32
    %c0_i32_1 = arith.constant 0 : i32
    return %c0_i32, %c0_i32_0 : i32, i32
  }
  func.func @transform_5(%arg0: i32) -> (i32, i32) {
    %c0_i32 = arith.constant 0 : i32
    %c0_i32_0 = arith.constant 0 : i32
    %c0_i32_1 = arith.constant 0 : i32
    return %c0_i32, %c0_i32_0 : i32, i32
  }
  func.func @transform_6(%arg0: i32) -> (i32, i32) {
    %c0_i32 = arith.constant 0 : i32
    %c0_i32_0 = arith.constant 0 : i32
    %c0_i32_1 = arith.constant 0 : i32
    return %c0_i32, %c0_i32_0 : i32, i32
  }
  func.func @transform_7(%arg0: i32) -> (i32, i32, i32) {
    %c0_i32 = arith.constant 0 : i32
    %c0_i32_0 = arith.constant 0 : i32
    %c0_i32_1 = arith.constant 0 : i32
    return %arg0, %c0_i32, %c0_i32_0 : i32, i32, i32
  }
  func.func @transform_8(%arg0: i32) -> (i32, i32) {
    %c0_i32 = arith.constant 0 : i32
    %c0_i32_0 = arith.constant 0 : i32
    %c0_i32_1 = arith.constant 0 : i32
    return %c0_i32, %c0_i32_0 : i32, i32
  }
}

</mosaic_0001>

<bundles_post_ra>
// kernel: lstm_sequence.1
= control target key start
LH: loop header
LB: loop body
LE: loop exit
PB: predicated region body
PF: predicated region fallthrough
CT: control target
= control target key end

     0   :  { %14 = vsyncpa [#allocation5], 0  ;;  %v1342_v2 = vmov 0   ;;  %s1745_s0 = inlined_call_operand.vmem [shape: f32[1,8,128], index: 0, kind: input, shape index: {}]   ;;  %s1746_s1 = inlined_call_operand.vmem [shape: f32[8,128], index: 1, kind: input, shape index: {}]   ;;  %s1747_s2 = inlined_call_operand.vmem [shape: f32[8,128], index: 2, kind: input, shape index: {}]   ;;  %s1748_s3 = inlined_call_operand.vmem [shape: bf16[128,512], index: 3, kind: input, shape index: {}]   ;;  %s1749_s4 = inlined_call_operand.vmem [shape: bf16[256,512], index: 4, kind: input, shape index: {}]   ;;  %s1750_s5 = inlined_call_operand.vmem [shape: bf16[128,128], index: 5, kind: input, shape index: {}]   ;;  %s1751_s6 = inlined_call_operand.vmem [shape: f32[1,512], index: 6, kind: input, shape index: {}]   ;;  %s1752_s7 = inlined_call_operand.hbm [shape: f32[1,8,128], index: 7, kind: output, shape index: {0}]   ;;  %s1753_s8 = inlined_call_operand.hbm [shape: f32[8,128], index: 8, kind: output, shape index: {1}]  }
   0x1   :  { %v1126_v0 = vld [vmem:[%s1748_s3 + $0x4] ss:$16 sps:$4 sm:$0xff]   ;;  %v1128_v1 = vld [vmem:[%s1748_s3 + $0xc] ss:$16 sps:$4 sm:$0xff]   ;;  %287 = vmatprep.mubr.bf16.mxu0 %v1342_v2  ;;  %328 = vmatprep.mubr.bf16.mxu1 %v1342_v2  ;;  %v1130_v3 = vld [vmem:[%s1748_s3] ss:$16 sps:$4 sm:$0xff]  }
   0x2   :  { %255 = vmatprep.subr.bf16.mxu0 %v1126_v0  ;;  %v1131_v4 = vld [vmem:[%s1748_s3 + $0x8] ss:$16 sps:$4 sm:$0xff]   ;;  %296 = vmatprep.subr.bf16.mxu1 %v1128_v1  ;;  %v1132_v5 = vld [vmem:[%s1748_s3 + $0x24] ss:$16 sps:$4 sm:$0xff]   ;;  %v1134_v6 = vld [vmem:[%s1748_s3 + $0x2c] ss:$16 sps:$4 sm:$0xff]  }
   0x3   :  { %256 = vmatpush1.bf16.msra.mxu0 %v1130_v3  ;;  %297 = vmatpush1.bf16.msra.mxu1 %v1131_v4  ;;  %v1136_v7 = vld [vmem:[%s1748_s3 + $0x20] ss:$16 sps:$4 sm:$0xff]   ;;  %v1137_v8 = vld [vmem:[%s1748_s3 + $0x28] ss:$16 sps:$4 sm:$0xff]   ;;  %v1138_v9 = vld [vmem:[%s1748_s3 + $0x44] ss:$16 sps:$4 sm:$0xff]  }
   0x4   :  { %257 = vmatprep.subr.bf16.mxu0 %v1132_v5  ;;  %298 = vmatprep.subr.bf16.mxu1 %v1134_v6  ;;  %v1140_v10 = vld [vmem:[%s1748_s3 + $0x4c] ss:$16 sps:$4 sm:$0xff]   ;;  %v1142_v11 = vld [vmem:[%s1748_s3 + $0x40] ss:$16 sps:$4 sm:$0xff]   ;;  %v1143_v12 = vld [vmem:[%s1748_s3 + $0x48] ss:$16 sps:$4 sm:$0xff]  }
   0x5   :  { %v1144_v13 = vld [vmem:[%s1748_s3 + $0x64] ss:$16 sps:$4 sm:$0xff]   ;;  %v1146_v14 = vld [vmem:[%s1748_s3 + $0x6c] ss:$16 sps:$4 sm:$0xff]   ;;  %v1148_v15 = vld [vmem:[%s1748_s3 + $0x60] ss:$16 sps:$4 sm:$0xff]  }
   0x6   :  { %v1149_v16 = vld [vmem:[%s1748_s3 + $0x68] ss:$16 sps:$4 sm:$0xff]   ;;  %v1150_v17 = vld [vmem:[%s1748_s3 + $0x84] ss:$16 sps:$4 sm:$0xff]   ;;  %v1152_v18 = vld [vmem:[%s1748_s3 + $0x8c] ss:$16 sps:$4 sm:$0xff]  }
   0x7   :  { %258 = vmatpush1.bf16.msra.mxu0 %v1136_v7  ;;  %299 = vmatpush1.bf16.msra.mxu1 %v1137_v8  ;;  %v1154_v19 = vld [vmem:[%s1748_s3 + $0x80] ss:$16 sps:$4 sm:$0xff]   ;;  %v1155_v20 = vld [vmem:[%s1748_s3 + $0x88] ss:$16 sps:$4 sm:$0xff]   ;;  %v1156_v21 = vld [vmem:[%s1748_s3 + $0xa4] ss:$16 sps:$4 sm:$0xff]  }
   0x8   :  { %259 = vmatprep.subr.bf16.mxu0 %v1138_v9  ;;  %300 = vmatprep.subr.bf16.mxu1 %v1140_v10  ;;  %v1158_v22 = vld [vmem:[%s1748_s3 + $0xac] ss:$16 sps:$4 sm:$0xff]   ;;  %v1160_v23 = vld [vmem:[%s1748_s3 + $0xa0] ss:$16 sps:$4 sm:$0xff]   ;;  %v1161_v24 = vld [vmem:[%s1748_s3 + $0xa8] ss:$16 sps:$4 sm:$0xff]  }
   0x9   :  { %v1162_v25 = vld [vmem:[%s1748_s3 + $0xc4] ss:$16 sps:$4 sm:$0xff]   ;;  %v1164_v26 = vld [vmem:[%s1748_s3 + $0xcc] ss:$16 sps:$4 sm:$0xff]   ;;  %v1166_v27 = vld [vmem:[%s1748_s3 + $0xc0] ss:$16 sps:$4 sm:$0xff]  }
   0xa   :  { %v1167_v28 = vld [vmem:[%s1748_s3 + $0xc8] ss:$16 sps:$4 sm:$0xff]   ;;  %v1168_v29 = vld [vmem:[%s1748_s3 + $0xe4] ss:$16 sps:$4 sm:$0xff]   ;;  %v1170_v30 = vld [vmem:[%s1748_s3 + $0xec] ss:$16 sps:$4 sm:$0xff]  }
   0xb   :  { %260 = vmatpush1.bf16.msra.mxu0 %v1142_v11  ;;  %301 = vmatpush1.bf16.msra.mxu1 %v1143_v12  ;;  %v1172_v31 = vld [vmem:[%s1748_s3 + $0xe0] ss:$16 sps:$4 sm:$0xff]   ;;  %v1173_v32 = vld [vmem:[%s1748_s3 + $0xe8] ss:$16 sps:$4 sm:$0xff]   ;;  %v1176_v34 = vld [vmem:[%s1749_s4 + $0x4] ss:$16 sps:$4 sm:$0xff]  }
   0xc   :  { %261 = vmatprep.subr.bf16.mxu0 %v1144_v13  ;;  %302 = vmatprep.subr.bf16.mxu1 %v1146_v14  ;;  %v39_v33 = vld [vmem:[%s1745_s0] sm:$0xff]  ;;  %v1179_v35 = vld [vmem:[%s1749_s4 + $0xc] ss:$16 sps:$4 sm:$0xff]   ;;  %v1177_v38 = vld [vmem:[%s1749_s4 + $0x8] ss:$16 sps:$4 sm:$0xff]  }
   0xd   :  { %v1174_v36 = vld [vmem:[%s1749_s4] ss:$16 sps:$4 sm:$0xff]   ;;  %v40_v37 = vpack.c.bf16 %v39_v33, %v39_v33  ;;  %v1182_v39 = vld [vmem:[%s1749_s4 + $0x24] ss:$16 sps:$4 sm:$0xff]   ;;  %v1185_v40 = vld [vmem:[%s1749_s4 + $0x2c] ss:$16 sps:$4 sm:$0xff]  }
   0xe   :  { %v1180_v41 = vld [vmem:[%s1749_s4 + $0x20] ss:$16 sps:$4 sm:$0xff]   ;;  %v1183_v42 = vld [vmem:[%s1749_s4 + $0x28] ss:$16 sps:$4 sm:$0xff]   ;;  %v1188_v43 = vld [vmem:[%s1749_s4 + $0x44] ss:$16 sps:$4 sm:$0xff]  }
   0xf   :  { %262 = vmatpush1.bf16.msra.mxu0 %v1148_v15  ;;  %303 = vmatpush1.bf16.msra.mxu1 %v1149_v16  ;;  %v1191_v44 = vld [vmem:[%s1749_s4 + $0x4c] ss:$16 sps:$4 sm:$0xff]   ;;  %v1186_v45 = vld [vmem:[%s1749_s4 + $0x40] ss:$16 sps:$4 sm:$0xff]   ;;  %v1189_v46 = vld [vmem:[%s1749_s4 + $0x48] ss:$16 sps:$4 sm:$0xff]  }
  0x10   :  { %263 = vmatprep.subr.bf16.mxu0 %v1150_v17  ;;  %304 = vmatprep.subr.bf16.mxu1 %v1152_v18  ;;  %v1194_v47 = vld [vmem:[%s1749_s4 + $0x64] ss:$16 sps:$4 sm:$0xff]   ;;  %v1197_v48 = vld [vmem:[%s1749_s4 + $0x6c] ss:$16 sps:$4 sm:$0xff]   ;;  %v1192_v49 = vld [vmem:[%s1749_s4 + $0x60] ss:$16 sps:$4 sm:$0xff]  }
  0x11   :  { %v1195_v50 = vld [vmem:[%s1749_s4 + $0x68] ss:$16 sps:$4 sm:$0xff]   ;;  %v1200_v51 = vld [vmem:[%s1749_s4 + $0x84] ss:$16 sps:$4 sm:$0xff]   ;;  %v1203_v52 = vld [vmem:[%s1749_s4 + $0x8c] ss:$16 sps:$4 sm:$0xff]  }
  0x12   :  { %v1198_v53 = vld [vmem:[%s1749_s4 + $0x80] ss:$16 sps:$4 sm:$0xff]   ;;  %v1201_v54 = vld [vmem:[%s1749_s4 + $0x88] ss:$16 sps:$4 sm:$0xff]   ;;  %v1206_v55 = vld [vmem:[%s1749_s4 + $0xa4] ss:$16 sps:$4 sm:$0xff]  }
  0x13   :  { %264 = vmatpush1.bf16.msra.mxu0 %v1154_v19  ;;  %305 = vmatpush1.bf16.msra.mxu1 %v1155_v20  ;;  %v1209_v56 = vld [vmem:[%s1749_s4 + $0xac] ss:$16 sps:$4 sm:$0xff]   ;;  %v1204_v57 = vld [vmem:[%s1749_s4 + $0xa0] ss:$16 sps:$4 sm:$0xff]   ;;  %v1207_v58 = vld [vmem:[%s1749_s4 + $0xa8] ss:$16 sps:$4 sm:$0xff]  }
  0x14   :  { %265 = vmatprep.subr.bf16.mxu0 %v1156_v21  ;;  %306 = vmatprep.subr.bf16.mxu1 %v1158_v22  ;;  %v1212_v59 = vld [vmem:[%s1749_s4 + $0xc4] ss:$16 sps:$4 sm:$0xff]   ;;  %v1215_v60 = vld [vmem:[%s1749_s4 + $0xcc] ss:$16 sps:$4 sm:$0xff]   ;;  %v1210_v61 = vld [vmem:[%s1749_s4 + $0xc0] ss:$16 sps:$4 sm:$0xff]  }
  0x15   :  { %v1213_v62 = vld [vmem:[%s1749_s4 + $0xc8] ss:$16 sps:$4 sm:$0xff]   ;;  %v1218_v63 = vld [vmem:[%s1749_s4 + $0xe4] ss:$16 sps:$4 sm:$0xff]   ;;  %v1221_v0 = vld [vmem:[%s1749_s4 + $0xec] ss:$16 sps:$4 sm:$0xff]  }
  0x16   :  { %v1216_v1 = vld [vmem:[%s1749_s4 + $0xe0] ss:$16 sps:$4 sm:$0xff]   ;;  %v1219_v2 = vld [vmem:[%s1749_s4 + $0xe8] ss:$16 sps:$4 sm:$0xff]   ;;  %v1224_v3 = vld [vmem:[%s1749_s4 + $0x104] ss:$16 sps:$4 sm:$0xff]  }
  0x17   :  { %266 = vmatpush1.bf16.msra.mxu0 %v1160_v23  ;;  %307 = vmatpush1.bf16.msra.mxu1 %v1161_v24  ;;  %v1227_v4 = vld [vmem:[%s1749_s4 + $0x10c] ss:$16 sps:$4 sm:$0xff]   ;;  %v1222_v5 = vld [vmem:[%s1749_s4 + $0x100] ss:$16 sps:$4 sm:$0xff]   ;;  %v1225_v6 = vld [vmem:[%s1749_s4 + $0x108] ss:$16 sps:$4 sm:$0xff]  }
  0x18   :  { %267 = vmatprep.subr.bf16.mxu0 %v1162_v25  ;;  %308 = vmatprep.subr.bf16.mxu1 %v1164_v26  ;;  %v1230_v7 = vld [vmem:[%s1749_s4 + $0x124] ss:$16 sps:$4 sm:$0xff]   ;;  %v1233_v9 = vld [vmem:[%s1749_s4 + $0x12c] ss:$16 sps:$4 sm:$0xff]   ;;  %v1228_v11 = vld [vmem:[%s1749_s4 + $0x120] ss:$16 sps:$4 sm:$0xff]  }
  0x19   :  { %v1605_v8 = vld [vmem:[%s1747_s2] sm:$0xff]  ;;  %v1231_v12 = vld [vmem:[%s1749_s4 + $0x128] ss:$16 sps:$4 sm:$0xff]   ;;  %v1239_v14 = vld [vmem:[%s1749_s4 + $0x14c] ss:$16 sps:$4 sm:$0xff]  }
  0x1a   :  { %v420_v10 = vpack.c.bf16 %v1605_v8, %v1605_v8  ;;  %v1236_v13 = vld [vmem:[%s1749_s4 + $0x144] ss:$16 sps:$4 sm:$0xff]  }
  0x1b   :  { %268 = vmatpush1.bf16.msra.mxu0 %v1166_v27  ;;  %309 = vmatpush1.bf16.msra.mxu1 %v1167_v28 }
  0x1c   :  { %269 = vmatprep.subr.bf16.mxu0 %v1168_v29  ;;  %310 = vmatprep.subr.bf16.mxu1 %v1170_v30 }
  0x1f   :  { %270 = vmatpush1.bf16.msra.mxu0 %v1172_v31  ;;  %311 = vmatpush1.bf16.msra.mxu1 %v1173_v32 }
  0x20   :  { %741 = vmatprep.subr.bf16.mxu0 %v1176_v34  ;;  %782 = vmatprep.subr.bf16.mxu1 %v1179_v35 }
  0x22   :  { %288 = vmatmul.mubr.bf16.vlgmr.msra.gmra.mrb[0].mxu0 %v40_v37  ;;  %329 = vmatmul.mubr.bf16.vlgmr.msra.gmra.mrb[0].mxu1 %v40_v37 }
  0x23   :  { %742 = vmatpush1.bf16.msra.mxu0 %v1174_v36  ;;  %783 = vmatpush1.bf16.msra.mxu1 %v1177_v38 }
  0x24   :  { %743 = vmatprep.subr.bf16.mxu0 %v1182_v39  ;;  %784 = vmatprep.subr.bf16.mxu1 %v1185_v40 }
  0x25   :  { %773 = vmatprep.mubr.bf16.mxu0 %v420_v10  ;;  %814 = vmatprep.mubr.bf16.mxu1 %v420_v10 }
  0x27   :  { %744 = vmatpush1.bf16.msra.mxu0 %v1180_v41  ;;  %785 = vmatpush1.bf16.msra.mxu1 %v1183_v42 }
  0x28   :  { %745 = vmatprep.subr.bf16.mxu0 %v1188_v43  ;;  %786 = vmatprep.subr.bf16.mxu1 %v1191_v44 }
  0x2b   :  { %746 = vmatpush1.bf16.msra.mxu0 %v1186_v45  ;;  %787 = vmatpush1.bf16.msra.mxu1 %v1189_v46 }
  0x2c   :  { %747 = vmatprep.subr.bf16.mxu0 %v1194_v47  ;;  %788 = vmatprep.subr.bf16.mxu1 %v1197_v48 }
  0x2f   :  { %748 = vmatpush1.bf16.msra.mxu0 %v1192_v49  ;;  %789 = vmatpush1.bf16.msra.mxu1 %v1195_v50 }
  0x30   :  { %749 = vmatprep.subr.bf16.mxu0 %v1200_v51  ;;  %790 = vmatprep.subr.bf16.mxu1 %v1203_v52 }
  0x33   :  { %750 = vmatpush1.bf16.msra.mxu0 %v1198_v53  ;;  %791 = vmatpush1.bf16.msra.mxu1 %v1201_v54 }
  0x34   :  { %751 = vmatprep.subr.bf16.mxu0 %v1206_v55  ;;  %792 = vmatprep.subr.bf16.mxu1 %v1209_v56 }
  0x37   :  { %752 = vmatpush1.bf16.msra.mxu0 %v1204_v57  ;;  %793 = vmatpush1.bf16.msra.mxu1 %v1207_v58 }
  0x38   :  { %753 = vmatprep.subr.bf16.mxu0 %v1212_v59  ;;  %794 = vmatprep.subr.bf16.mxu1 %v1215_v60 }
  0x3b   :  { %754 = vmatpush1.bf16.msra.mxu0 %v1210_v61  ;;  %795 = vmatpush1.bf16.msra.mxu1 %v1213_v62 }
  0x3c   :  { %755 = vmatprep.subr.bf16.mxu0 %v1218_v63  ;;  %796 = vmatprep.subr.bf16.mxu1 %v1221_v0 }
  0x3f   :  { %756 = vmatpush1.bf16.msra.mxu0 %v1216_v1  ;;  %797 = vmatpush1.bf16.msra.mxu1 %v1219_v2 }
  0x40   :  { %757 = vmatprep.subr.bf16.mxu0 %v1224_v3  ;;  %798 = vmatprep.subr.bf16.mxu1 %v1227_v4 }
  0x43   :  { %758 = vmatpush1.bf16.msra.mxu0 %v1222_v5  ;;  %799 = vmatpush1.bf16.msra.mxu1 %v1225_v6 }
  0x44   :  { %759 = vmatprep.subr.bf16.mxu0 %v1230_v7  ;;  %800 = vmatprep.subr.bf16.mxu1 %v1233_v9 }
  0x45   :  { %15 = vsyncpa [#allocation7], 0  ;;  %v1234_v15 = vld [vmem:[%s1749_s4 + $0x140] ss:$16 sps:$4 sm:$0xff]   ;;  %v1237_v16 = vld [vmem:[%s1749_s4 + $0x148] ss:$16 sps:$4 sm:$0xff]   ;;  %v75_v48 = vlaneseq }
  0x46   :  { %v1242_v17 = vld [vmem:[%s1749_s4 + $0x164] ss:$16 sps:$4 sm:$0xff]   ;;  %v1245_v18 = vld [vmem:[%s1749_s4 + $0x16c] ss:$16 sps:$4 sm:$0xff]   ;;  %v1240_v19 = vld [vmem:[%s1749_s4 + $0x160] ss:$16 sps:$4 sm:$0xff]  }
  0x47   :  { %760 = vmatpush1.bf16.msra.mxu0 %v1228_v11  ;;  %801 = vmatpush1.bf16.msra.mxu1 %v1231_v12  ;;  %v1243_v20 = vld [vmem:[%s1749_s4 + $0x168] ss:$16 sps:$4 sm:$0xff]   ;;  %v1248_v21 = vld [vmem:[%s1749_s4 + $0x184] ss:$16 sps:$4 sm:$0xff]   ;;  %v1251_v22 = vld [vmem:[%s1749_s4 + $0x18c] ss:$16 sps:$4 sm:$0xff]  }
  0x48   :  { %761 = vmatprep.subr.bf16.mxu0 %v1236_v13  ;;  %802 = vmatprep.subr.bf16.mxu1 %v1239_v14  ;;  %v1246_v23 = vld [vmem:[%s1749_s4 + $0x180] ss:$16 sps:$4 sm:$0xff]   ;;  %v1249_v24 = vld [vmem:[%s1749_s4 + $0x188] ss:$16 sps:$4 sm:$0xff]   ;;  %v1254_v25 = vld [vmem:[%s1749_s4 + $0x1a4] ss:$16 sps:$4 sm:$0xff]  }
  0x49   :  { %v1257_v26 = vld [vmem:[%s1749_s4 + $0x1ac] ss:$16 sps:$4 sm:$0xff]   ;;  %v1252_v27 = vld [vmem:[%s1749_s4 + $0x1a0] ss:$16 sps:$4 sm:$0xff]   ;;  %v1255_v28 = vld [vmem:[%s1749_s4 + $0x1a8] ss:$16 sps:$4 sm:$0xff]  }
  0x4a   :  { %v1260_v29 = vld [vmem:[%s1749_s4 + $0x1c4] ss:$16 sps:$4 sm:$0xff]   ;;  %v1263_v30 = vld [vmem:[%s1749_s4 + $0x1cc] ss:$16 sps:$4 sm:$0xff]   ;;  %v1258_v31 = vld [vmem:[%s1749_s4 + $0x1c0] ss:$16 sps:$4 sm:$0xff]  }
  0x4b   :  { %762 = vmatpush1.bf16.msra.mxu0 %v1234_v15  ;;  %803 = vmatpush1.bf16.msra.mxu1 %v1237_v16  ;;  %v1261_v32 = vld [vmem:[%s1749_s4 + $0x1c8] ss:$16 sps:$4 sm:$0xff]   ;;  %v1266_v33 = vld [vmem:[%s1749_s4 + $0x1e4] ss:$16 sps:$4 sm:$0xff]   ;;  %v1269_v34 = vld [vmem:[%s1749_s4 + $0x1ec] ss:$16 sps:$4 sm:$0xff]  }
  0x4c   :  { %763 = vmatprep.subr.bf16.mxu0 %v1242_v17  ;;  %804 = vmatprep.subr.bf16.mxu1 %v1245_v18  ;;  %v1264_v35 = vld [vmem:[%s1749_s4 + $0x1e0] ss:$16 sps:$4 sm:$0xff]   ;;  %v1267_v36 = vld [vmem:[%s1749_s4 + $0x1e8] ss:$16 sps:$4 sm:$0xff]   ;;  %v1343_v40 = vmov 0.0   ;;  %vm1344_vm0 = vmmov 0  }
  0x4d   :  { %v35_v37 = vld [vmem:[%s1746_s1] sm:$0xff]  ;;  %v1271_v41 = vld [vmem:[%s1750_s5 + $0x8] sm:$0xff]   ;;  %v1272_v42 = vld [vmem:[%s1750_s5 + $0x10] sm:$0xff]   ;;  %v76_v49 = vshrl.u32 %v75_v48, 7 }
  0x4e   :  { %v419_v38 = vpack.c.bf16 %v35_v37, %v35_v37  ;;  %v1270_v39 = vld [vmem:[%s1750_s5] sm:$0xff]   ;;  %v1273_v43 = vld [vmem:[%s1750_s5 + $0x18] sm:$0xff]   ;;  %v1275_v45 = vld [vmem:[%s1750_s5 + $0x28] sm:$0xff]  }
  0x4f   :  { %764 = vmatpush1.bf16.msra.mxu0 %v1240_v19  ;;  %805 = vmatpush1.bf16.msra.mxu1 %v1243_v20  ;;  %v1274_v44 = vld [vmem:[%s1750_s5 + $0x20] sm:$0xff]   ;;  %v1276_v46 = vld [vmem:[%s1750_s5 + $0x30] sm:$0xff]   ;;  %v1277_v47 = vld [vmem:[%s1750_s5 + $0x38] sm:$0xff]   ;;  %v77_v50 = vsub.s32 0, %v76_v49  ;;  %v81_v52 = vsub.s32 1, %v76_v49  ;;  %v85_v3 = vsub.s32 2, %v76_v49 }
  0x50   :  { %765 = vmatprep.subr.bf16.mxu0 %v1248_v21  ;;  %806 = vmatprep.subr.bf16.mxu1 %v1251_v22  ;;  %v73_v51 = vld [vmem:[%s1751_s6] sm:$0xf]  ;;  %s1345_s5 = smov [#allocation6]  }
  0x51   :  { %v78_v53 = vrot.slane %v73_v51, %v77_v50  ;;  %v82_v54 = vrot.slane %v73_v51, %v81_v52  ;;  %v86_v4 = vrot.slane %v73_v51, %v85_v3  ;;  %s961_s6 = sshll.u32 %s1345_s5, 4  ;;  %s962_s6 = int_to_ptr.vmem [resolvable:$true] %s961_s6 }
  0x52   :  { %s1294_s28 = scalar_lea.vmem %s962_s6, 128  ;;  %p1299_p1 = scmp.lt.s32.totalorder %s962_s6, %s962_s6 }
  0x53   :  { %766 = vmatpush1.bf16.msra.mxu0 %v1246_v23  ;;  %807 = vmatpush1.bf16.msra.mxu1 %v1249_v24  ;;  %p1295_p0 = scmp.ne.s32.totalorder %s962_s6, %s1294_s28  ;;  %p1300_p2 = scmp.lt.s32.totalorder %s1294_s28, %s1294_s28 }
  0x54   :  { %767 = vmatprep.subr.bf16.mxu0 %v1254_v25  ;;  %808 = vmatprep.subr.bf16.mxu1 %v1257_v26 }
  0x55   :  { %p1301_p3 = por %p1300_p2, %p1299_p1 }
  0x57   :  { %768 = vmatpush1.bf16.msra.mxu0 %v1252_v27  ;;  %809 = vmatpush1.bf16.msra.mxu1 %v1255_v28  ;;  %p1302_p4 = pnand %p1301_p3, %p1295_p0 }
  0x58   :  { %769 = vmatprep.subr.bf16.mxu0 %v1260_v29  ;;  %810 = vmatprep.subr.bf16.mxu1 %v1263_v30 }
  0x5b   :  { %770 = vmatpush1.bf16.msra.mxu0 %v1258_v31  ;;  %811 = vmatpush1.bf16.msra.mxu1 %v1261_v32 }
  0x5c   :  { %771 = vmatprep.subr.bf16.mxu0 %v1266_v33  ;;  %812 = vmatprep.subr.bf16.mxu1 %v1269_v34 }
  0x5f   :  { %772 = vmatpush1.bf16.msra.mxu0 %v1264_v35  ;;  %813 = vmatpush1.bf16.msra.mxu1 %v1267_v36 }
  0x60   :  { %1089 = vmatprep.subr.bf16.mxu0 %v1343_v40 }
  0x62   :  { %774 = vmatmul.mubr.bf16.vlgmr.msra.gmra.mrb[0].mxu0 %v419_v38  ;;  %815 = vmatmul.mubr.bf16.vlgmr.msra.gmra.mrb[0].mxu1 %v419_v38 }
  0x63   :  { %1090 = vmatpush3.bf16.msra.mxu0 %v1270_v39  ;;  %1105 = vmatprep.mubr.msk.bf16.mxu0 %vm1344_vm0, %v1343_v40 }
  0x64   :  { %1091 = vmatprep.subr.bf16.mxu0 %v1343_v40 }
  0x67   :  { %1092 = vmatpush3.bf16.msra.mxu0 %v1271_v41 }
  0x68   :  { %1093 = vmatprep.subr.bf16.mxu0 %v1343_v40 }
  0x6b   :  { %1094 = vmatpush3.bf16.msra.mxu0 %v1272_v42 }
  0x6c   :  { %1095 = vmatprep.subr.bf16.mxu0 %v1343_v40 }
  0x6f   :  { %1096 = vmatpush3.bf16.msra.mxu0 %v1273_v43 }
  0x70   :  { %1097 = vmatprep.subr.bf16.mxu0 %v1343_v40 }
  0x73   :  { %1098 = vmatpush3.bf16.msra.mxu0 %v1274_v44 }
  0x74   :  { %1099 = vmatprep.subr.bf16.mxu0 %v1343_v40 }
  0x77   :  { %1100 = vmatpush3.bf16.msra.mxu0 %v1275_v45 }
  0x78   :  { %1101 = vmatprep.subr.bf16.mxu0 %v1343_v40 }
  0x7b   :  { %1102 = vmatpush3.bf16.msra.mxu0 %v1276_v46 }
  0x7c   :  { %1103 = vmatprep.subr.bf16.mxu0 %v1343_v40 }
  0x7f   :  { %1104 = vmatpush3.bf16.msra.mxu0 %v1277_v47 }
 0x135   :  { %v775_v55 = vpop.f32.mrb[0].mxu0  ;;  %v816_v56 = vpop.f32.mrb[0].mxu1 }
 0x136   :  { %v1109_v57 = vadd.f32 %v775_v55, %v78_v53  ;;  %v777_v58 = vpop.f32.mrb[1].mxu0  ;;  %v818_v59 = vpop.f32.mrb[1].mxu1  ;;  %v1111_v5 = vadd.f32 %v816_v56, %v86_v4 }
 0x137   :  { %v1110_v60 = vadd.f32 %v777_v58, %v82_v54  ;;  %v779_v61 = vpop.f32.mrb[2].mxu0  ;;  %v820_v62 = vpop.f32.mrb[2].mxu1 }
 0x138   :  { %v1069_v63 = vmul.f32 -1.442695, %v1109_v57  ;;  %v780_v0 = vpop.f32.mrb[3].mxu0  ;;  %v821_v1 = vpop.f32.mrb[3].mxu1 }
 0x139   :  { %v1070_v2 = vmul.f32 -1.442695, %v1110_v60 }
 0x13a   :  { %1278 = vpow2.f32 %v1069_v63 }
 0x13b   :  { %1280 = vpow2.f32 %v1070_v2 }
 0x13c   :  { %1282 = vtanh.f32 %v1111_v5 }
 0x144   :  { %v1279_v6 = vpop.eup %1278 }
 0x145   :  { %v1281_v7 = vpop.eup %1280  ;;  %v830_v9 = vadd.f32 1.0, %v1279_v6 }
 0x146   :  { %v836_v10 = vadd.f32 1.0, %v1281_v7  ;;  %v1283_v11 = vpop.eup %1282 }
 0x147   :  { %1284 = vrcp.f32 %v830_v9 }
 0x148   :  { %1286 = vrcp.f32 %v836_v10 }
 0x151   :  { %v1285_v12 = vpop.eup %1284 }
 0x152   :  { %v1287_v13 = vpop.eup %1286  ;;  %v841_v14 = vmul.f32 %v1285_v12, %v1283_v11 }
 0x153   :  { %v840_v15 = vmul.f32 %v1287_v13, %v1605_v8 }
 0x155   :  { %v842_v16 = vadd.f32 %v841_v14, %v840_v15 }
 0x157   :  { %v843_v17 = vpack.c.bf16 %v842_v16, %v842_v16  ;;  %944 = vst [vmem:[#allocation6] sm:$0xff] %v842_v16 }
 0x159   :  { %1106 = vmatmul.mubr.bf16.vlgmr.msra.gmra.mrb[4].mxu0 %v843_v17 }
 0x15a   :  { %1305 = shalt.err (!%p1302_p4)
}
 0x15b   :  { %s1306_s9 = scalar_lea.hbm %s1753_s8, 128 }
 0x15c   :  { %p1307_p5 = scmp.ne.s32.totalorder %s1753_s8, %s1306_s9  ;;  %p1310_p6 = scmp.lt.u32.totalorder %s1306_s9, %s1753_s8 }
 0x15e   :  { %p1312_p7 = pnand %p1310_p6, %p1307_p5 }
 0x160   :  { %1315 = shalt.err (!%p1312_p7)
}
 0x161   :  { %964 = dma.vmem_to_hbm [thread:$0]  %s962_s6, 128, %s1753_s8, [#allocation7]   ;;  %v89_v8 = vsub.s32 3, %v76_v49 }
 0x162   :  { %s1346_s2 = smov [#allocation4]  }
 0x163   :  { %v90_v18 = vrot.slane %v73_v51, %v89_v8  ;;  %s951_s4 = sshll.u32 %s1346_s2, 4  ;;  %s952_s4 = int_to_ptr.vmem [resolvable:$true] %s951_s4 }
 0x164   :  { %s1316_s8 = scalar_lea.vmem %s952_s4, 128  ;;  %p1321_p9 = scmp.lt.s32.totalorder %s952_s4, %s952_s4 }
 0x165   :  { %v1112_v19 = vadd.f32 %v818_v59, %v90_v18  ;;  %p1317_p8 = scmp.ne.s32.totalorder %s952_s4, %s1316_s8  ;;  %p1322_p10 = scmp.lt.s32.totalorder %s1316_s8, %s1316_s8 }
 0x167   :  { %p1323_p11 = por %p1322_p10, %p1321_p9 }
 0x169   :  { %p1324_p12 = pnand %p1323_p11, %p1317_p8 }
 0x22c   :  { %v926_v20 = vpop.f32.mrb[4].mxu0 }
 0x22d   :  { %v932_v21 = vadd.f32 %v1112_v19, %v926_v20  ;;  %v1107_v22 = vpop.f32.mrb[5].mxu0 }
 0x22e   :  { %v929_v23 = vpop.f32.mrb[6].mxu0 }
 0x22f   :  { %v1079_v24 = vmul.f32 -1.442695, %v932_v21  ;;  %v1108_v25 = vpop.f32.mrb[7].mxu0 }
 0x231   :  { %1288 = vpow2.f32 %v1079_v24 }
 0x232   :  { %1290 = vtanh.f32 %v842_v16 }
 0x23b   :  { %v1289_v26 = vpop.eup %1288 }
 0x23c   :  { %v936_v27 = vadd.f32 1.0, %v1289_v26  ;;  %v1291_v28 = vpop.eup %1290 }
 0x23e   :  { %1292 = vrcp.f32 %v936_v27 }
 0x248   :  { %v1293_v29 = vpop.eup %1292 }
 0x249   :  { %v940_v30 = vmul.f32 %v1293_v29, %v1291_v28 }
 0x24b   :  { %941 = vst [vmem:[#allocation4] sm:$0xff] %v940_v30 }
 0x24c   :  { %1327 = shalt.err (!%p1324_p12)
}
 0x24d   :  { %s1328_s15 = scalar_lea.hbm %s1752_s7, 128 }
 0x24e   :  { %p1329_p13 = scmp.ne.s32.totalorder %s1752_s7, %s1328_s15  ;;  %p1332_p0 = scmp.lt.u32.totalorder %s1328_s15, %s1752_s7 }
 0x250   :  { %p1334_p1 = pnand %p1332_p0, %p1329_p13 }
 0x252   :  { %1337 = shalt.err (!%p1334_p1)
}
 0x253   :  { %954 = dma.vmem_to_hbm [thread:$0]  %s952_s4, 128, %s1752_s7, [#allocation5]  }
 0x254   :  { %1338 = dma.done.wait [#allocation5], 128  }
 0x255   :  { %1339 = vsyncadd [#allocation5], 4294967168 }
 0x256   :  { %1340 = dma.done.wait [#allocation7], 128  }
 0x257   :  { %1341 = vsyncadd [#allocation7], 4294967168 }
 0x258   :  { %971 = vsyncpa [#allocation5], 1 }
 0x259   :  { %972 = vsyncpa [#allocation7], 1 }

</bundles_post_ra>
